<compile_context>
chip_gen: v7x
topology: tpu7x:2x2x1
jax: 0.10.0
libtpu: 0.0.40
codegen_flags: <defaults>
</compile_context>

<pallas_src>
import functools

import jax
import jax.numpy as jnp
from jax.experimental import pallas as pl
from jax.experimental.pallas import tpu as pltpu


def _round_up(x, m):
    return ((x + m - 1) // m) * m


def _contrastive_loss_kernel(o1_ref, o2_ref, t_ref, out_ref, *, margin, eps):
    """One (TB, D) batch tile; accumulates a per-core partial loss sum.

    out_ref is a (1, 1, 128) block resident across the inner (reduction)
    grid axis; each of the 128 lanes carries the same partial sum (lane-dense
    unmasked stores).
    """
    i = pl.program_id(1)

    @pl.when(i == 0)
    def _():
        out_ref[...] = jnp.zeros_like(out_ref)

    o1 = o1_ref[...].astype(jnp.float32)          # (TB, D)
    o2 = o2_ref[...].astype(jnp.float32)          # (TB, D)
    t = t_ref[...]                                # (TB, 1) f32, pre-cast in wrapper

    diff = o2 - o1
    distances = jnp.sum(diff * diff, axis=1, keepdims=True)        # (TB, 1)
    hinge = jnp.maximum(margin - jnp.sqrt(distances + eps), 0.0)   # relu(margin - sqrt(d+eps))
    losses = 0.5 * (t * distances + (1.0 - t) * hinge * hinge)     # (TB, 1)

    out_ref[...] = out_ref[...] + jnp.sum(losses)   # scalar broadcast over lanes


def contrastive_loss(output1, output2, target, margin, size_average=True, eps=1e-9):
    """JAX/Pallas equivalent of ContrastiveLoss.forward.

    output1, output2: (B, D) float arrays (f32 or bf16)
    target:           (B,) int/float array (1 = same class, 0 = different)
    """
    B, D = output1.shape
    itemsize = jnp.dtype(output1.dtype).itemsize

    NS = 2  # batch split across (up to) 2 TensorCores; serial on 1-TC chips

    # Keep double-buffered inputs (2 inputs x 2 buffers x TB x D x itemsize)
    # under ~8 MiB -> safe inside the scoped VMEM limit on v5e/v6e/v7x.
    tb_vmem = (8 * 1024 * 1024) // (4 * D * itemsize)
    tb_vmem = max(8, (tb_vmem // 8) * 8)
    TB = min(512, tb_vmem, _round_up(B, 8))

    Bp = _round_up(B, NS * TB)          # padded batch
    T = Bp // (NS * TB)                 # reduction tiles per core

    t2d = target.reshape(B, 1).astype(jnp.float32)
    if Bp != B:
        pad = Bp - B
        output1 = jnp.pad(output1, ((0, pad), (0, 0)))
        output2 = jnp.pad(output2, ((0, pad), (0, 0)))
        # Padded rows: d = 0 and t = 1  =>  loss contribution is exactly 0.
        t2d = jnp.pad(t2d, ((0, pad), (0, 0)), constant_values=1.0)

    kernel = functools.partial(
        _contrastive_loss_kernel, margin=float(margin), eps=float(eps)
    )

    cost = pl.CostEstimate(
        flops=5 * Bp * D,
        transcendentals=Bp,                       # sqrt per row
        bytes_accessed=2 * Bp * D * itemsize + Bp * 4 + NS * 128 * 4,
    )

    partials = pl.pallas_call(
        kernel,
        out_shape=jax.ShapeDtypeStruct((NS, 1, 128), jnp.float32),
        grid_spec=pltpu.PrefetchScalarGridSpec(
            num_scalar_prefetch=0,
            grid=(NS, T),
            in_specs=[
                pl.BlockSpec((TB, D), lambda c, i: (c * T + i, 0)),
                pl.BlockSpec((TB, D), lambda c, i: (c * T + i, 0)),
                pl.BlockSpec((TB, 1), lambda c, i: (c * T + i, 0)),
            ],
            out_specs=pl.BlockSpec((1, 1, 128), lambda c, i: (c, 0, 0)),
        ),
        compiler_params=pltpu.CompilerParams(
            dimension_semantics=("parallel", "arbitrary"),
            vmem_limit_bytes=32 * 1024 * 1024,
        ),
        cost_estimate=cost,
    )(output1, output2, t2d)

    total = jnp.sum(partials[:, 0, 0])            # sum the per-core partials
    if size_average:
        total = total / B                         # divide by the FULL batch
    return total


def contrastive_loss_ref(output1, output2, target, margin, size_average=True, eps=1e-9):
    """Pure-JAX reference matching the PyTorch semantics exactly."""
    distances = jnp.sum((output2 - output1).astype(jnp.float32) ** 2, axis=1)
    t = target.astype(jnp.float32)
    losses = 0.5 * (
        t * distances
        + (1.0 - t) * jnp.maximum(margin - jnp.sqrt(distances + eps), 0.0) ** 2
    )
    return jnp.mean(losses) if size_average else jnp.sum(losses)


if __name__ == "__main__":
    key = jax.random.PRNGKey(0)
    k1, k2, k3 = jax.random.split(key, 3)

    # Small smoke-test shapes (batch=8, hidden=32).
    B, D = 8, 32
    margin = 1.0

    output1 = jax.random.normal(k1, (B, D), dtype=jnp.float32)
    output2 = jax.random.normal(k2, (B, D), dtype=jnp.float32)
    target = jax.random.bernoulli(k3, 0.5, (B,)).astype(jnp.int32)

    loss = contrastive_loss(output1, output2, target, margin, size_average=True)
    loss = jax.block_until_ready(loss)
    ref = contrastive_loss_ref(output1, output2, target, margin, size_average=True)
    assert jnp.allclose(loss, ref, rtol=1e-5, atol=1e-6), (loss, ref)

    # Also exercise a non-tile-aligned batch and size_average=False.
    B2, D2 = 13, 160
    o1 = jax.random.normal(k1, (B2, D2), dtype=jnp.float32)
    o2 = jax.random.normal(k2, (B2, D2), dtype=jnp.float32)
    tgt = jax.random.bernoulli(k3, 0.5, (B2,)).astype(jnp.int32)
    l2 = jax.block_until_ready(
        contrastive_loss(o1, o2, tgt, margin, size_average=False)
    )
    r2 = contrastive_loss_ref(o1, o2, tgt, margin, size_average=False)
    assert jnp.allclose(l2, r2, rtol=1e-5, atol=1e-5), (l2, r2)

    print("KERNEL_OK")
</pallas_src>

<mosaic_0001>
module attributes {stable_mosaic.version = 11 : i64} {
  func.func @_contrastive_loss_kernel(%arg0: i32, %arg1: i32, %arg2: memref<8x32xf32, #tpu.memory_space<vmem>>, %arg3: memref<8x32xf32, #tpu.memory_space<vmem>>, %arg4: memref<8x1xf32, #tpu.memory_space<vmem>>, %arg5: memref<1x1x128xf32, #tpu.memory_space<vmem>>) attributes {dimension_semantics = [#tpu.dimension_semantics<parallel>, #tpu.dimension_semantics<arbitrary>], iteration_bounds = array<i64: 2, 1>, scalar_prefetch = 0 : i64, scratch_operands = 0 : i64, tpu.core_type = #tpu.core_type<tc>, window_params = [{transform_indices = @transform_0, window_bounds = array<i64: 8, 32>}, {transform_indices = @transform_1, window_bounds = array<i64: 8, 32>}, {transform_indices = @transform_2, window_bounds = array<i64: 8, 1>}, {transform_indices = @transform_3, window_bounds = array<i64: 1, 1, 128>}]} {
    %c0_i32 = arith.constant 0 : i32
    %0 = arith.cmpi eq, %arg1, %c0_i32 : i32
    %1 = arith.extui %0 : i1 to i32
    %c0_i32_0 = arith.constant 0 : i32
    %2 = arith.cmpi ne, %1, %c0_i32_0 : i32
    scf.if %2 {
      %cst_18 = arith.constant 0.000000e+00 : f32
      %33 = vector.broadcast %cst_18 : f32 to vector<1x1x128xf32>
      %c0_19 = arith.constant 0 : index
      %c0_20 = arith.constant 0 : index
      %c0_21 = arith.constant 0 : index
      %34 = vector.load %arg5[%c0_19, %c0_20, %c0_21] : memref<1x1x128xf32, #tpu.memory_space<vmem>>, vector<1x1x128xf32>
      tpu.vector_store %arg5[%c0_19, %c0_20, %c0_21], %33 {strides = array<i32>} : memref<1x1x128xf32, #tpu.memory_space<vmem>>, vector<1x1x128xf32>,
    } else {
    }
    %c0 = arith.constant 0 : index
    %c0_1 = arith.constant 0 : index
    %3 = vector.load %arg2[%c0, %c0_1] : memref<8x32xf32, #tpu.memory_space<vmem>>, vector<8x32xf32>
    %c0_2 = arith.constant 0 : index
    %c0_3 = arith.constant 0 : index
    %4 = vector.load %arg3[%c0_2, %c0_3] : memref<8x32xf32, #tpu.memory_space<vmem>>, vector<8x32xf32>
    %c0_4 = arith.constant 0 : index
    %c0_5 = arith.constant 0 : index
    %5 = vector.load %arg4[%c0_4, %c0_5] : memref<8x1xf32, #tpu.memory_space<vmem>>, vector<8x1xf32>
    %6 = arith.subf %4, %3 : vector<8x32xf32>
    %7 = arith.mulf %6, %6 : vector<8x32xf32>
    %cst = arith.constant dense<0.000000e+00> : vector<8xf32>
    %8 = vector.multi_reduction <add>, %7, %cst [1] : vector<8x32xf32> to vector<8xf32>
    %9 = vector.shape_cast %8 : vector<8xf32> to vector<8x1xf32>
    %cst_6 = arith.constant 9.99999971E-10 : f32
    %10 = vector.broadcast %cst_6 : f32 to vector<8x1xf32>
    %11 = arith.addf %9, %10 : vector<8x1xf32>
    %12 = math.sqrt %11 : vector<8x1xf32>
    %cst_7 = arith.constant 1.000000e+00 : f32
    %13 = vector.broadcast %cst_7 : f32 to vector<8x1xf32>
    %14 = arith.subf %13, %12 : vector<8x1xf32>
    %cst_8 = arith.constant 0.000000e+00 : f32
    %15 = vector.broadcast %cst_8 : f32 to vector<8x1xf32>
    %16 = arith.maximumf %14, %15 : vector<8x1xf32>
    %17 = arith.mulf %5, %9 : vector<8x1xf32>
    %cst_9 = arith.constant 1.000000e+00 : f32
    %18 = vector.broadcast %cst_9 : f32 to vector<8x1xf32>
    %19 = arith.subf %18, %5 : vector<8x1xf32>
    %20 = arith.mulf %19, %16 : vector<8x1xf32>
    %21 = arith.mulf %20, %16 : vector<8x1xf32>
    %22 = arith.addf %17, %21 : vector<8x1xf32>
    %cst_10 = arith.constant 5.000000e-01 : f32
    %23 = vector.broadcast %cst_10 : f32 to vector<8x1xf32>
    %24 = arith.mulf %23, %22 : vector<8x1xf32>
    %c0_11 = arith.constant 0 : index
    %c0_12 = arith.constant 0 : index
    %c0_13 = arith.constant 0 : index
    %25 = vector.load %arg5[%c0_11, %c0_12, %c0_13] : memref<1x1x128xf32, #tpu.memory_space<vmem>>, vector<1x1x128xf32>
    %26 = vector.shape_cast %24 : vector<8x1xf32> to vector<1x8x1xf32>
    %cst_14 = arith.constant dense<0.000000e+00> : vector<1xf32>
    %27 = vector.multi_reduction <add>, %26, %cst_14 [1, 2] : vector<1x8x1xf32> to vector<1xf32>
    %28 = vector.shape_cast %27 : vector<1xf32> to vector<1x1x1xf32>
    %29 = vector.extract %28[0, 0, 0] : f32 from vector<1x1x1xf32>
    %30 = vector.broadcast %29 : f32 to vector<1x1x128xf32>
    %31 = arith.addf %25, %30 : vector<1x1x128xf32>
    %c0_15 = arith.constant 0 : index
    %c0_16 = arith.constant 0 : index
    %c0_17 = arith.constant 0 : index
    %32 = vector.load %arg5[%c0_15, %c0_16, %c0_17] : memref<1x1x128xf32, #tpu.memory_space<vmem>>, vector<1x1x128xf32>
    tpu.vector_store %arg5[%c0_15, %c0_16, %c0_17], %31 {strides = array<i32>} : memref<1x1x128xf32, #tpu.memory_space<vmem>>, vector<1x1x128xf32>,
    return
  }
  func.func @transform_0(%arg0: i32, %arg1: i32) -> (i32, i32) {
    %c1_i32 = arith.constant 1 : i32
    %0 = arith.muli %arg0, %c1_i32 : i32
    %1 = arith.addi %0, %arg1 : i32
    %c0_i32 = arith.constant 0 : i32
    %c0_i32_0 = arith.constant 0 : i32
    return %1, %c0_i32 : i32, i32
  }
  func.func @transform_1(%arg0: i32, %arg1: i32) -> (i32, i32) {
    %c1_i32 = arith.constant 1 : i32
    %0 = arith.muli %arg0, %c1_i32 : i32
    %1 = arith.addi %0, %arg1 : i32
    %c0_i32 = arith.constant 0 : i32
    %c0_i32_0 = arith.constant 0 : i32
    return %1, %c0_i32 : i32, i32
  }
  func.func @transform_2(%arg0: i32, %arg1: i32) -> (i32, i32) {
    %c1_i32 = arith.constant 1 : i32
    %0 = arith.muli %arg0, %c1_i32 : i32
    %1 = arith.addi %0, %arg1 : i32
    %c0_i32 = arith.constant 0 : i32
    %c0_i32_0 = arith.constant 0 : i32
    return %1, %c0_i32 : i32, i32
  }
  func.func @transform_3(%arg0: i32, %arg1: i32) -> (i32, i32, i32) {
    %c0_i32 = arith.constant 0 : i32
    %c0_i32_0 = arith.constant 0 : i32
    %c0_i32_1 = arith.constant 0 : i32
    return %arg0, %c0_i32, %c0_i32_0 : i32, i32, i32
  }
}

</mosaic_0001>

<bundles_post_ra>
// kernel: tpu_custom_call.1
= control target key start
LH: loop header
LB: loop body
LE: loop exit
PB: predicated region body
PF: predicated region fallthrough
CT: control target
= control target key end

     0   :  { %8 = vsyncpa [#allocation3], 0  ;;  %s804_s0 = inlined_call_operand.vmem [shape: f32[16,32], index: 0, kind: input, shape index: {}]   ;;  %s805_s1 = inlined_call_operand.hbm [shape: f32[16,32], index: 1, kind: input, shape index: {}]   ;;  %s806_s2 = inlined_call_operand.vmem [shape: f32[16,1], index: 2, kind: input, shape index: {}]   ;;  %s807_s3 = inlined_call_operand.hbm [shape: f32[2,1,128], index: 3, kind: output, shape index: {}]  }
   0x1   :  { %10 = vsyncpa [#allocation3 + $0x1], 0 }
   0x2   :  { %11 = vsyncpa [#allocation4], 0 }
   0x3   :  { %13 = vsyncpa [#allocation4 + $0x1], 0  ;;  %s623_s12 = smov 0   ;;  %s625_s13 = smov 0  }
   0x4   :  { %s627_s14 = smov 0   ;;  %s629_s15 = smov 0  }
   0x5   :  { %s631_s16 = smov 0   ;;  %s633_s17 = smov 0  }
   0x6 LB: > { %s406_s18 = sadd.s32 4294967295, %s598_s17   ;;  %s407_s19 = sadd.s32 4294967294, %s598_s17   ;;  %s598_s17 = sphi %s633_s17, %s19_s17   ;;  %s594_s16 = sphi %s631_s16, %s823_s16   ;;  %s590_s15 = sphi %s629_s15, %s822_s15   ;;  %s586_s14 = sphi %s627_s14, %s821_s14   ;;  %s582_s13 = sphi %s625_s13, %s820_s13   ;;  %s578_s12 = sphi %s623_s12, %s819_s12  }
   0x7   : > { %s31_s20 = sadd.s32 1, %s594_s16  ;;  %s68_s21 = sadd.s32 1, %s586_s14 }
   0x8   : > { %p33_p0 = scmp.ge.s32.totalorder %s31_s20, 2  ;;  %p75_p1 = scmp.ne.s32.totalorder %s586_s14, %s582_s13 }
   0x9   : > { %p76_p2 = scmp.eq.s32.totalorder %s598_s17, 0  ;;  %p81_p3 = scmp.ne.s32.totalorder %s582_s13, %s578_s12 }
   0xa   : > { %s825_s20 = smov (%p33_p0, %s31_s20), 0  ;;  %p82_p5 = scmp.eq.s32.totalorder %s406_s18, 0 }
   0xb   : > { %p664_p4 = por %p76_p2, %p75_p1  ;;  %s65_s23 = ssub.s32 %s594_s16, %s825_s20 }
   0xc   : > { %p133_p6 = scmp.eq.s32.totalorder %s406_s18, 1  ;;  %p66_p7 = scmp.eq.s32.totalorder %s65_s23, 0 }
   0xd   : > { %p670_p8 = por %p82_p5, %p81_p3  ;;  %p139_p10 = scmp.eq.s32.totalorder %s407_s19, 1 }
   0xe   : > { %p674_p9 = por %p133_p6, %p75_p1  ;;  %p433_p13 = scmp.lt.s32.totalorder %s598_s17, 2 }
   0xf   : > { %s679_s26 = scalar_select %p66_p7, %s586_s14, %s68_s21  }
  0x10   : > { %s811_s25 = scalar_select %p674_p9, 1, 0 }
  0x11   : > { %p681_p11 = por %p139_p10, %p81_p3  ;;  %s168_s28 = sand.u32 1, %s586_s14  }
  0x12   : > { %s410_s29 = sshll.u32 %s168_s28, 3  ;;  %s411_s30 = sshll.u32 %s594_s16, 7 }
  0x13   : > { %s812_s27 = scalar_select %p681_p11, 1, 0 }
  0x14   : > { %s692_s6 = scalar_lea.hbm %s805_s1, %s411_s30  ;;  %s172_s7 = scalar_lea.vmem [#allocation2], %s410_s29 }
  0x15   : > { %s180_s8 = sshll.u32 %s172_s7, 4  ;;  %p698_p0 = pnand %p433_p13, %p664_p4  ;;  %s694_s8 = int_to_ptr.vmem [resolvable:$true] %s180_s8 }
  0x16   : > { %s169_s10 = scalar_lea.sflag [#allocation3], %s168_s28  ;;  %s486_s11 = scalar_lea.hbm %s692_s6, 128 }
  0x17   : > { %p487_p3 = scmp.ne.s32.totalorder %s692_s6, %s486_s11  ;;  %p488_p5 = pneg %p698_p0 }
  0x18   : > { %s491_s21 = scalar_lea.hbm %s805_s1, 256  ;;  %p492_p4 = scmp.lt.u32.totalorder %s692_s6, %s805_s1 }
  0x19   : > { %p489_p6 = pnand %p488_p5, %p487_p3  ;;  %p493_p10 = scmp.lt.u32.totalorder %s491_s21, %s486_s11 }
  0x1a   : > { %p495_p12 = scmp.lt.u32.totalorder %s486_s11, %s692_s6 }
  0x1b   : > { %p490_p7 = pneg %p489_p6  ;;  %p494_p13 = por %p493_p10, %p492_p4 }
  0x1d   : > { %p496_p1 = por %p495_p12, %p494_p13 }
  0x1f   : > { %p497_p2 = pnand %p496_p1, %p490_p7 }
  0x21   : > { %500 = shalt.err (!%p497_p2)
}
  0x22   : > { %s501_s28 = scalar_lea.vmem %s694_s8, 128  ;;  %s600_s29 = smov [#allocation2]  }
  0x23   : > { %p502_p3 = scmp.ne.s32.totalorder %s694_s8, %s501_s28  ;;  %s506_s30 = sshll.u32 %s600_s29, 4  ;;  %s507_s30 = int_to_ptr.vmem [resolvable:$false] %s506_s30 }
  0x24   : > { %s508_s4 = scalar_lea.vmem %s507_s30, 256  ;;  %p509_p9 = scmp.lt.s32.totalorder %s694_s8, %s507_s30 }
  0x25   : > { %p504_p6 = pnand %p502_p3, %p488_p5  ;;  %p510_p4 = scmp.lt.s32.totalorder %s508_s4, %s501_s28 }
  0x27   : > { %p505_p11 = pneg %p504_p6  ;;  %p511_p10 = por %p510_p4, %p509_p9 }
  0x29   : > { %p512_p12 = pnand %p511_p10, %p505_p11 }
  0x2b   : > { %515 = shalt.err (!%p512_p12)
}
  0x2c   : > { %428 = dma.hbm_to_vmem [thread:$0]  (!%p698_p0), %s692_s6, 128, %s694_s8, %s169_s10  }
  0x2d   : > { %p814_p1 = scmp.lt.s32.totalorder %s598_s17, 3  ;;  %p815_p2 = scmp.ge.s32.totalorder %s598_s17, 1 }
  0x2f   : > { %p195_p5 = pnand %p815_p2, %p814_p1 }
  0x30   : > { %s734_s5 = sand.u32 (!%p195_p5), 1, %s582_s13  }
  0x31   : > { %198 = sbr.rel (%p195_p5) target bundleno = 462 (0x1ce), region = 32  ;;  %s413_s7 = sshll.u32 (!%p195_p5), %s734_s5, 3 }
  0x32   : > { %s201_s11 = scalar_lea.sflag (!%p195_p5), [#allocation3], %s734_s5  ;;  %s204_s18 = scalar_lea.vmem (!%p195_p5), [#allocation2], %s413_s7 }
  0x38   : > { %569 = dma.done.wait (%p670_p8), %s201_s11, 128  }
  0x39   : > { %571 = vsyncadd (%p670_p8), %s201_s11, 4294967168  ;;  %p237_p9 = scmp.lt.s32.totalorder %s590_s15, 1  ;;  %v255_v1 = vld [vmem:[%s204_s18] sm:$0xff]  ;;  %vm259_vm0 = vcmask 261120   ;;  %vm280_vm3 = vcmask 7168   ;;  %s235_s23 = scalar_lea.vmem [#allocation5], %s734_s5 }
  0x3a   : > { %v601_v22 = vmov 0.0   ;;  %s416_s28 = sshll.u32 %s590_s15, 4  ;;  %s307_s29 = sshll.u32 %s235_s23, 4  ;;  %s757_s29 = int_to_ptr.vmem [resolvable:$true] %s307_s29 }
  0x3b   : > { %s238_s6 = scalar_select %p237_p9, %s590_s15, 1  ;;  %253 = vst [vmem:[%s235_s23] sm:$0x1] %v601_v22 }
  0x3c   : > { %s755_s11 = scalar_lea.hbm %s807_s3, %s416_s28  ;;  %s295_s18 = scalar_lea.sflag [#allocation4], %s734_s5 }
  0x3d   : > { %s414_s8 = sshll.u32 %s238_s6, 3  ;;  %s516_s6 = scalar_lea.vmem %s757_s29, 16 }
  0x3e   : > { %s240_s19 = scalar_lea.vmem %s804_s0, %s414_s8  ;;  %s247_s22 = scalar_lea.vmem %s806_s2, %s414_s8 }
  0x3f   : > { %v254_v0 = vld [vmem:[%s240_s19] sm:$0xff]  ;;  %p517_p8 = scmp.ne.s32.totalorder %s757_s29, %s516_s6  ;;  %p816_p11 = scmp.ne.s32.totalorder %s811_s25, 0 }
  0x40   : > { %v257_v2 = vsub.f32 %v255_v1, %v254_v0  ;;  %v256_v11 = vld [vmem:[%s247_s22] sm:$0xff]  ;;  %s602_s15 = smov [#allocation5]  }
  0x41   : > { %v274_v13 = vsub.f32 1.0, %v256_v11  ;;  %p518_p0 = pnand %p517_p8, %p816_p11  ;;  %s520_s8 = sshll.u32 %s602_s15, 4  ;;  %s521_s8 = int_to_ptr.vmem [resolvable:$false] %s520_s8 }
  0x42   : > { %v258_v3 = vmul.f32 %v257_v2, %v257_v2  ;;  %v279_v30 = vld [vmem:[%s235_s23] sm:$0x1]  ;;  %s522_s9 = scalar_lea.vmem %s521_s8, 32  ;;  %p523_p13 = scmp.lt.s32.totalorder %s757_s29, %s521_s8 }
  0x43   : > { %p519_p7 = pneg %p518_p0  ;;  %p524_p3 = scmp.lt.s32.totalorder %s522_s9, %s516_s6 }
  0x44   : > { %v260_v4 = vsel %vm259_vm0, %v258_v3, 0.0 }
  0x45   : > { %261 = vadd.xlane.f32.xlu0 %v260_v4  ;;  %p525_p6 = por %p524_p3, %p523_p13 }
  0x47   : > { %p526_p4 = pnand %p525_p6, %p519_p7 }
  0xd2   : > { %v262_v5 = vpop.xlane.xlu0 %261 }
  0xd3   : > { %v263_v6 = vadd.f32 1e-09, %v262_v5  ;;  %v273_v17 = vmul.f32 %v262_v5, %v256_v11 }
  0xd5   : > { %484 = vrsqrt.f32 %v263_v6  ;;  %vm266_vm1 = vcmp.eq.f32.partialorder %v263_v6, inf  ;;  %v269_v9 = vand.u32 2147483648, %v263_v6  ;;  %vm268_vm2 = vcmp.eq.f32.partialorder %v263_v6, 0.0 }
  0xdf   : > { %v485_v7 = vpop.eup %484 }
  0xe0   : > { %v265_v8 = vmul.f32 %v485_v7, %v263_v6 }
  0xe2   : > { %v267_v10 = vsel %vm266_vm1, %v263_v6, %v265_v8 }
  0xe3   : > { %v270_v12 = vsel %vm268_vm2, %v269_v9, %v267_v10 }
  0xe4   : > { %v271_v14 = vsub.f32 1.0, %v270_v12 }
  0xe6   : > { %v272_v15 = vmax.f32 %v271_v14, 0.0 }
  0xe8   : > { %v275_v16 = vmul.f32 %v274_v13, %v272_v15 }
  0xea   : > { %v276_v18 = vmul.f32 %v275_v16, %v272_v15 }
  0xec   : > { %v277_v19 = vadd.f32 %v276_v18, %v273_v17 }
  0xee   : > { %v278_v20 = vmul.f32 0.5, %v277_v19 }
  0xf0   : > { %v281_v21 = vsel %vm280_vm3, %v278_v20, 0.0 }
  0xf1   : > { %282 = vadd.xlane.f32.xlu0 %v281_v21 }
 0x17e   : > { %v283_v23 = vpop.xlane.xlu0 %282 }
 0x17f   : > { %v284_v24 = vrot.slane %v283_v23, 4 }
 0x181   : > { %v285_v25 = vadd.f32 %v284_v24, %v283_v23 }
 0x183   : > { %v286_v26 = vrot.slane %v285_v25, 2 }
 0x185   : > { %v287_v27 = vadd.f32 %v286_v26, %v285_v25 }
 0x187   : > { %v288_v28 = vrot.slane %v287_v27, 1 }
 0x189   : > { %v289_v29 = vadd.f32 %v288_v28, %v287_v27 }
 0x18b   : > { %419 = vpush %v289_v29 }
 0x1bc   : > { %s420_s30 = spop %419 }
 0x1bd   : > { %v291_v31 = vstv %s420_s30 }
 0x1be   : > { %v292_v32 = vadd.f32 %v291_v31, %v279_v30 }
 0x1c0   : > { %293 = vst [vmem:[%s235_s23] sm:$0x1] %v292_v32 }
 0x1c1   : > { %529 = shalt.err (!%p526_p4)
}
 0x1c2   : > { %s530_s5 = scalar_lea.hbm %s755_s11, 16  ;;  %s534_s24 = scalar_lea.hbm %s807_s3, 32 }
 0x1c3   : > { %p531_p10 = scmp.ne.s32.totalorder %s755_s11, %s530_s5  ;;  %p535_p2 = scmp.lt.u32.totalorder %s755_s11, %s807_s3 }
 0x1c4   : > { %p536_p5 = scmp.lt.u32.totalorder %s534_s24, %s530_s5  ;;  %p538_p8 = scmp.lt.u32.totalorder %s530_s5, %s755_s11 }
 0x1c5   : > { %p532_p12 = pnand %p531_p10, %p816_p11 }
 0x1c6   : > { %p537_p9 = por %p536_p5, %p535_p2 }
 0x1c7   : > { %p533_p1 = pneg %p532_p12 }
 0x1c8   : > { %p539_p0 = por %p538_p8, %p537_p9 }
 0x1ca   : > { %p540_p7 = pnand %p539_p0, %p533_p1 }
 0x1cc   : > { %543 = shalt.err (!%p540_p7)
}
 0x1cd   : > { %423 = dma.vmem_to_hbm [thread:$0]  (%p816_p11), %s757_s29, 16, %s755_s11, %s295_s18  }
 0x1ce PF: > { %s319_s23 = sand.u32 1, %s578_s12   ;;  %p817_p13 = scmp.ne.s32.totalorder %s812_s27, 0 }
 0x1cf   : > { %p818_p3 = scmp.ge.s32.totalorder %s598_s17, 2  ;;  %s320_s28 = scalar_lea.sflag [#allocation4], %s319_s23 }
 0x1d1   : > { %p430_p6 = pnand %p818_p3, %p817_p13 }
 0x1d3   : > { %573 = dma.done.wait (!%p430_p6), %s320_s28, 16  }
 0x1d4   : > { %575 = vsyncadd (!%p430_p6), %s320_s28, 4294967280  ;;  %s19_s17 = sadd.s32 1, %s598_s17   ;;  %s819_s12 = smov %s582_s13 }
 0x1d5   : > { %p16_p4 = scmp.ge.s32.totalorder %s19_s17, 4   ;;  %s820_s13 = smov %s586_s14 }
 0x1d6   : > { %s821_s14 = smov %s679_s26  ;;  %s822_s15 = smov %s594_s16 }
 0x1d7   : > { %s823_s16 = smov %s825_s20  ;;  %18 = sbr.rel (!%p16_p4) target bundleno = 6 (0x6), region = 87 }
 0x1de   :  { %324 = vsyncpa [#allocation3], 1 }
 0x1df   :  { %326 = vsyncpa [#allocation3 + $0x1], 1 }
 0x1e0   :  { %327 = vsyncpa [#allocation4], 1 }
 0x1e1   :  { %329 = vsyncpa [#allocation4 + $0x1], 1 }

</bundles_post_ra>
